<compile_context>
chip_gen: v5e
topology: v5e:2x2
jax: 0.10.0
libtpu: 0.0.40
codegen_flags: <defaults>
</compile_context>

<pallas_src>
import functools

import jax
import jax.numpy as jnp
from jax import lax
from jax.experimental import pallas as pl
from jax.experimental.pallas import tpu as pltpu


_MASK = -1e30  # large finite negative for padded kv columns (avoids inf/NaN edge cases)


# --------------------------------------------------------------------------
# Pass 1: fused QKV projection (1x1 conv), computed once per pixel.
# --------------------------------------------------------------------------
def _qkv_proj_kernel(x_ref, w_ref, b_ref, q_ref, k_ref, v_ref, *, scale):
    """Grid = (batch, spatial_tile).

    x_ref : (1, C, T)   input pixels (channels on sublanes, spatial on lanes)
    w_ref : (3C, C)     fused q/k/v weights (PyTorch (out, in) layout, mxu_dtype)
    b_ref : (3C, 1)     fused bias (f32)
    q/k/v_ref : (1, C, T) outputs in mxu_dtype; q is pre-scaled by 1/sqrt(C).
    """
    C = q_ref.shape[1]
    qkv = jnp.dot(w_ref[...], x_ref[0],
                  preferred_element_type=jnp.float32) + b_ref[...]    # (3C, T) f32
    # NOTE: the row split is clean when C is a multiple of the sublane tile
    # (8 f32 / 16 bf16); otherwise it costs a tiny relayout, but only once per
    # pixel -- it is out of the attention inner loop.
    q_ref[0] = (qkv[:C] * scale).astype(q_ref.dtype)
    k_ref[0] = qkv[C:2 * C].astype(k_ref.dtype)
    v_ref[0] = qkv[2 * C:].astype(v_ref.dtype)


# --------------------------------------------------------------------------
# Pass 2a: flash-style attention + output projection (multi kv-tile case).
# --------------------------------------------------------------------------
def _flash_attn_kernel(q_ref, k_ref, v_ref, wp_ref, bp_ref, o_ref,
                       m_scr, l_scr, acc_scr, *,
                       mxu_dtype, n_valid, n_pad, approx_recip):
    """Grid = (batch, q_tiles, kv_tiles); kv is the sequential online-softmax axis.

    q_ref : (1, C, Tq)   pre-scaled queries (mxu_dtype)
    k_ref : (1, C, Tkv)  keys   (mxu_dtype)
    v_ref : (1, C, Tkv)  values (mxu_dtype)
    wp_ref: (C, C)       output projection weights (mxu_dtype)
    bp_ref: (C, 1)       output projection bias (f32)
    o_ref : (1, C, Tq)   output pixels (lane-dense store)
    """
    ki = pl.program_id(2)
    nk = pl.num_programs(2)
    tkv = k_ref.shape[2]

    @pl.when(ki == 0)
    def _init():
        m_scr[...] = jnp.full(m_scr.shape, _MASK, jnp.float32)
        l_scr[...] = jnp.zeros(l_scr.shape, jnp.float32)
        acc_scr[...] = jnp.zeros(acc_scr.shape, jnp.float32)

    k = k_ref[0]                                                     # (C, Tkv)
    v = v_ref[0]                                                     # (C, Tkv)
    # s[j, i] = sum_c k[c, j] * q[c, i]: channel contraction expressed with
    # dot_general so no (C, Tkv) -> (Tkv, C) transpose is materialized (XLU).
    s = lax.dot_general(k, q_ref[0],
                        dimension_numbers=(((0,), (0,)), ((), ())),
                        preferred_element_type=jnp.float32)          # (Tkv, Tq)
    if n_valid < n_pad:  # static: only emitted when the spatial dim was padded
        col = ki * tkv + lax.broadcasted_iota(jnp.int32, (tkv, 1), 0)
        s = jnp.where(col < n_valid, s, _MASK)

    # Online softmax over the kv axis (axis 0); statistics are lane-dense (1, Tq).
    m_prev = m_scr[...]
    m_new = jnp.maximum(m_prev, jnp.max(s, axis=0, keepdims=True))
    alpha = jnp.exp(m_prev - m_new)                                  # (1, Tq)
    p = jnp.exp(s - m_new)                                           # (Tkv, Tq)
    l_scr[...] = alpha * l_scr[...] + jnp.sum(p, axis=0, keepdims=True)
    acc_scr[...] = alpha * acc_scr[...] + jnp.dot(
        v, p.astype(mxu_dtype), preferred_element_type=jnp.float32)  # (C, Tq)
    m_scr[...] = m_new

    @pl.when(ki == nk - 1)
    def _finalize():
        inv_l = pl.reciprocal(l_scr[...], approx=approx_recip)       # (1, Tq)
        out = (acc_scr[...] * inv_l).astype(mxu_dtype)               # (C, Tq)
        y = jnp.dot(wp_ref[...], out,
                    preferred_element_type=jnp.float32) + bp_ref[...]
        o_ref[0] = y.astype(o_ref.dtype)


# --------------------------------------------------------------------------
# Pass 2b: single kv-tile specialization (no online-softmax machinery).
# --------------------------------------------------------------------------
def _attn_single_kernel(q_ref, k_ref, v_ref, wp_ref, bp_ref, o_ref, *,
                        mxu_dtype, n_valid, approx_recip):
    """Grid = (batch, q_tiles); the whole (padded) kv axis fits in one block."""
    n_pad = k_ref.shape[2]
    k = k_ref[0]
    v = v_ref[0]
    s = lax.dot_general(k, q_ref[0],
                        dimension_numbers=(((0,), (0,)), ((), ())),
                        preferred_element_type=jnp.float32)          # (Npad, Tq)
    if n_valid < n_pad:
        row = lax.broadcasted_iota(jnp.int32, (n_pad, 1), 0)
        s = jnp.where(row < n_valid, s, _MASK)
    m = jnp.max(s, axis=0, keepdims=True)
    p = jnp.exp(s - m)
    l = jnp.sum(p, axis=0, keepdims=True)
    out = jnp.dot(v, p.astype(mxu_dtype), preferred_element_type=jnp.float32)
    out = (out * pl.reciprocal(l, approx=approx_recip)).astype(mxu_dtype)
    y = jnp.dot(wp_ref[...], out, preferred_element_type=jnp.float32) + bp_ref[...]
    o_ref[0] = y.astype(o_ref.dtype)


# --------------------------------------------------------------------------
# Wrapper.
# --------------------------------------------------------------------------
def _vmem_capacity_bytes():
    """Physical VMEM per TensorCore; conservative v7x fallback (64 MiB)."""
    try:
        return int(pltpu.get_tpu_info().vmem_capacity_bytes)
    except Exception:
        return 64 * 1024 * 1024


def _pick_tile(n_pad, cap):
    """Largest multiple of 128 that divides n_pad and is <= cap (n_pad if small)."""
    if n_pad <= cap:
        return n_pad
    best = 128
    t = 256
    while t <= cap:
        if n_pad % t == 0:
            best = t
        t += 128
    return best


def self_attention_pallas(x_nchw, wq, wk, wv, wp, bq, bk, bv, bp, *,
                          tq=None, tkv=None, mxu_dtype=jnp.bfloat16):
    """x_nchw: (B, C, H, W). Weights w*: (C, C) PyTorch (out_ch, in_ch); biases b*: (C,)."""
    B, C, H, W = x_nchw.shape
    N = H * W
    N_pad = ((N + 127) // 128) * 128               # lane-align the spatial dim

    vmem_cap = _vmem_capacity_bytes()
    # Generation-aware tiling / VMEM budget: ~54 MiB limit + <=512 tiles on v7x
    # (64 MiB VMEM), ~108 MiB + <=1024 tiles on v5e/v6e (128 MiB VMEM).
    tile_cap = 1024 if vmem_cap >= (100 << 20) else 512
    vmem_limit = max(32 << 20, min(int(vmem_cap * 0.85), 110 << 20))

    if tq is None:
        tq = _pick_tile(N_pad, tile_cap)
    if tkv is None:
        tkv = _pick_tile(N_pad, tile_cap)
    assert N_pad % tq == 0 and N_pad % tkv == 0, "tiles must divide padded H*W"
    assert tq % 128 == 0 and tkv % 128 == 0

    # Channels-first (C, N): channels on sublanes, spatial on lanes -> no
    # NCHW<->NHWC transposes anywhere; all MXU operands are pre-cast here so
    # the kernels carry no per-step casts.
    # TODO(synk): for very small C (e.g. the C=4 test shape) the channel axis
    # underfills vregs/MXU; packing batch (or heads) into the sublane axis is
    # the next restructuring step for production small-C shapes.
    x_cn = x_nchw.reshape(B, C, N)
    if N_pad != N:
        x_cn = jnp.pad(x_cn, ((0, 0), (0, 0), (0, N_pad - N)))
    x_cn = x_cn.astype(mxu_dtype)

    wqkv = jnp.concatenate([wq, wk, wv], axis=0).astype(mxu_dtype)         # (3C, C)
    bqkv = jnp.concatenate([bq, bk, bv], axis=0).reshape(3 * C, 1).astype(jnp.float32)
    wp_c = wp.astype(mxu_dtype)
    bp_c = bp.reshape(C, 1).astype(jnp.float32)

    # ---- Pass 1: QKV projection once per pixel, stored in mxu_dtype ----------
    tp = tkv
    qkv_block = pl.BlockSpec((1, C, tp), lambda b, i: (b, 0, i))
    outs = pl.pallas_call(
        functools.partial(_qkv_proj_kernel, scale=float(1.0 / (C ** 0.5))),
        out_shape=[jax.ShapeDtypeStruct((B, C, N_pad), mxu_dtype)] * 3,
        grid_spec=pltpu.PrefetchScalarGridSpec(
            num_scalar_prefetch=0,
            grid=(B, N_pad // tp),
            in_specs=[
                pl.BlockSpec((1, C, tp), lambda b, i: (b, 0, i)),
                pl.BlockSpec((3 * C, C), lambda b, i: (0, 0)),
                pl.BlockSpec((3 * C, 1), lambda b, i: (0, 0)),
            ],
            out_specs=[qkv_block, qkv_block, qkv_block],
        ),
        compiler_params=pltpu.CompilerParams(
            dimension_semantics=("parallel", "parallel"),
            vmem_limit_bytes=vmem_limit,
        ),
    )(x_cn, wqkv, bqkv)
    q_all, k_all, v_all = outs

    # ---- Pass 2: attention + output projection --------------------------------
    nq = N_pad // tq
    nk = N_pad // tkv
    approx_recip = (mxu_dtype != jnp.float32)      # exact reciprocal on f32 path
    out_shape = jax.ShapeDtypeStruct((B, C, N_pad), x_nchw.dtype)

    if nk == 1:
        kernel = functools.partial(_attn_single_kernel, mxu_dtype=mxu_dtype,
                                   n_valid=N, approx_recip=approx_recip)
        y_cn = pl.pallas_call(
            kernel,
            out_shape=out_shape,
            grid_spec=pltpu.PrefetchScalarGridSpec(
                num_scalar_prefetch=0,
                grid=(B, nq),
                in_specs=[
                    pl.BlockSpec((1, C, tq), lambda b, qi: (b, 0, qi)),
                    pl.BlockSpec((1, C, N_pad), lambda b, qi: (b, 0, 0)),
                    pl.BlockSpec((1, C, N_pad), lambda b, qi: (b, 0, 0)),
                    pl.BlockSpec((C, C), lambda b, qi: (0, 0)),
                    pl.BlockSpec((C, 1), lambda b, qi: (0, 0)),
                ],
                out_specs=pl.BlockSpec((1, C, tq), lambda b, qi: (b, 0, qi)),
            ),
            compiler_params=pltpu.CompilerParams(
                dimension_semantics=("parallel", "parallel"),
                vmem_limit_bytes=vmem_limit,
            ),
        )(q_all, k_all, v_all, wp_c, bp_c)
    else:
        # Deeper pipelining only on the blocks that change every kv step, and
        # only when the kv loop is long enough for a third buffer to matter
        # (hides the K/V fetch on bandwidth-limited v5e).
        kv_kwargs = dict(pipeline_mode=pl.Buffered(3)) if nk >= 3 else {}
        kernel = functools.partial(_flash_attn_kernel, mxu_dtype=mxu_dtype,
                                   n_valid=N, n_pad=N_pad,
                                   approx_recip=approx_recip)
        y_cn = pl.pallas_call(
            kernel,
            out_shape=out_shape,
            grid_spec=pltpu.PrefetchScalarGridSpec(
                num_scalar_prefetch=0,
                grid=(B, nq, nk),
                in_specs=[
                    pl.BlockSpec((1, C, tq), lambda b, qi, ki: (b, 0, qi)),
                    pl.BlockSpec((1, C, tkv), lambda b, qi, ki: (b, 0, ki), **kv_kwargs),
                    pl.BlockSpec((1, C, tkv), lambda b, qi, ki: (b, 0, ki), **kv_kwargs),
                    pl.BlockSpec((C, C), lambda b, qi, ki: (0, 0)),
                    pl.BlockSpec((C, 1), lambda b, qi, ki: (0, 0)),
                ],
                out_specs=pl.BlockSpec((1, C, tq), lambda b, qi, ki: (b, 0, qi)),
                scratch_shapes=[
                    pltpu.VMEM((1, tq), jnp.float32),    # running max m
                    pltpu.VMEM((1, tq), jnp.float32),    # running denom l
                    pltpu.VMEM((C, tq), jnp.float32),    # un-normalized output acc
                ],
            ),
            compiler_params=pltpu.CompilerParams(
                # Batch & q-tile axes shard across TensorCores (megacore / v7x);
                # kv is the sequential online-softmax reduction.
                # NOTE(v7x): keep B * (N_pad // tq) >= 2 (ideally even) so both
                # TensorCores stay busy.
                dimension_semantics=("parallel", "parallel", "arbitrary"),
                vmem_limit_bytes=vmem_limit,
            ),
        )(q_all, k_all, v_all, wp_c, bp_c)

    if N_pad != N:
        y_cn = y_cn[:, :, :N]
    return y_cn.reshape(B, C, H, W)


def self_attention_reference(x, wq, wk, wv, wp, bq, bk, bv, bp):
    """Pure-JAX reference mirroring the PyTorch module."""
    B, C, H, W = x.shape
    N = H * W
    xf = x.reshape(B, C, N)
    q = jnp.einsum('oc,bcn->bon', wq, xf) + bq[None, :, None]
    k = jnp.einsum('oc,bcn->bon', wk, xf) + bk[None, :, None]
    v = jnp.einsum('oc,bcn->bon', wv, xf) + bv[None, :, None]
    attn = jnp.einsum('bci,bcj->bij', q, k) / (C ** 0.5)
    attn = jax.nn.softmax(attn, axis=-1)
    out = jnp.einsum('bij,bcj->bci', attn, v)
    y = jnp.einsum('oc,bcn->bon', wp, out) + bp[None, :, None]
    return y.reshape(B, C, H, W)


if __name__ == "__main__":
    B, C, H, W = 2, 4, 16, 16

    key = jax.random.PRNGKey(0)
    kx, kqkv_w, kqkv_b, kp_w, kp_b = jax.random.split(key, 5)

    x = jax.random.normal(kx, (B, C, H, W), dtype=jnp.float32)

    # nn.Conv2d(dim, dim*3, 1): weight (3C, C, 1, 1) -> (3C, C), bias (3C,)
    w_qkv = jax.random.normal(kqkv_w, (3 * C, C), dtype=jnp.float32) * 0.1
    b_qkv = jax.random.normal(kqkv_b, (3 * C,), dtype=jnp.float32) * 0.1
    wq, wk, wv = w_qkv[0:C], w_qkv[C:2 * C], w_qkv[2 * C:3 * C]
    bq, bk, bv = b_qkv[0:C], b_qkv[C:2 * C], b_qkv[2 * C:3 * C]

    # nn.Conv2d(dim, dim, 1): weight (C, C, 1, 1) -> (C, C), bias (C,)
    wp = jax.random.normal(kp_w, (C, C), dtype=jnp.float32) * 0.1
    bp = jax.random.normal(kp_b, (C,), dtype=jnp.float32) * 0.1

    y_ref = self_attention_reference(x, wq, wk, wv, wp, bq, bk, bv, bp)

    # (a) fp32-MXU flash path (N=256 -> 2 q-tiles x 2 kv-tiles): exercises the
    #     online-softmax accumulation across kv steps; exact reciprocal.
    y_f32 = self_attention_pallas(x, wq, wk, wv, wp, bq, bk, bv, bp,
                                  tq=128, tkv=128, mxu_dtype=jnp.float32)
    jax.block_until_ready(y_f32)
    assert y_f32.shape == (B, C, H, W)
    assert jnp.allclose(y_f32, y_ref, atol=2e-3, rtol=2e-3), "fp32 flash kernel mismatch"

    # (b) default bf16 path: whole padded spatial dim in one kv tile -> the
    #     statically specialized single-kv kernel.
    y_bf16 = self_attention_pallas(x, wq, wk, wv, wp, bq, bk, bv, bp)
    jax.block_until_ready(y_bf16)
    assert y_bf16.shape == (B, C, H, W)
    assert jnp.allclose(y_bf16, y_ref, atol=3e-2, rtol=3e-2), "bf16 single-tile mismatch"

    # (c) bf16 flash path.
    y_bf16_fl = self_attention_pallas(x, wq, wk, wv, wp, bq, bk, bv, bp,
                                      tq=128, tkv=128)
    jax.block_until_ready(y_bf16_fl)
    assert jnp.allclose(y_bf16_fl, y_ref, atol=3e-2, rtol=3e-2), "bf16 flash mismatch"

    # (d) non-128-aligned spatial size (9x9 -> N=81, padded to 128): padding +
    #     kv masking in the single-kv kernel.
    x2 = jax.random.normal(kx, (B, C, 9, 9), dtype=jnp.float32)
    y2_ref = self_attention_reference(x2, wq, wk, wv, wp, bq, bk, bv, bp)
    y2 = self_attention_pallas(x2, wq, wk, wv, wp, bq, bk, bv, bp,
                               mxu_dtype=jnp.float32)
    jax.block_until_ready(y2)
    assert y2.shape == (B, C, 9, 9)
    assert jnp.allclose(y2, y2_ref, atol=2e-3, rtol=2e-3), "padded single-kv mismatch"

    # (e) non-128-aligned spatial size (15x15 -> N=225, padded to 256) with
    #     128-wide tiles: padding + kv masking on the last tile of the flash path.
    x3 = jax.random.normal(kx, (B, C, 15, 15), dtype=jnp.float32)
    y3_ref = self_attention_reference(x3, wq, wk, wv, wp, bq, bk, bv, bp)
    y3 = self_attention_pallas(x3, wq, wk, wv, wp, bq, bk, bv, bp,
                               tq=128, tkv=128, mxu_dtype=jnp.float32)
    jax.block_until_ready(y3)
    assert y3.shape == (B, C, 15, 15)
    assert jnp.allclose(y3, y3_ref, atol=2e-3, rtol=2e-3), "padded flash mismatch"

    print("KERNEL_OK")
</pallas_src>

<mosaic_0001>
module attributes {stable_mosaic.version = 11 : i64} {
  func.func @_qkv_proj_kernel(%arg0: i32, %arg1: i32, %arg2: memref<1x4x128xf32, #tpu.memory_space<vmem>>, %arg3: memref<12x4xf32, #tpu.memory_space<vmem>>, %arg4: memref<12x1xf32, #tpu.memory_space<vmem>>, %arg5: memref<1x4x128xf32, #tpu.memory_space<vmem>>, %arg6: memref<1x4x128xf32, #tpu.memory_space<vmem>>, %arg7: memref<1x4x128xf32, #tpu.memory_space<vmem>>) attributes {dimension_semantics = [#tpu.dimension_semantics<parallel>, #tpu.dimension_semantics<parallel>], iteration_bounds = array<i64: 2, 2>, scalar_prefetch = 0 : i64, scratch_operands = 0 : i64, tpu.core_type = #tpu.core_type<tc>, window_params = [{transform_indices = @transform_0, window_bounds = array<i64: 1, 4, 128>}, {pipeline_mode = #tpu.pipeline_mode<synchronous>, transform_indices = @transform_1, window_bounds = array<i64: 12, 4>}, {pipeline_mode = #tpu.pipeline_mode<synchronous>, transform_indices = @transform_2, window_bounds = array<i64: 12, 1>}, {transform_indices = @transform_3, window_bounds = array<i64: 1, 4, 128>}, {transform_indices = @transform_4, window_bounds = array<i64: 1, 4, 128>}, {transform_indices = @transform_5, window_bounds = array<i64: 1, 4, 128>}]} {
    %c0 = arith.constant 0 : index
    %c0_0 = arith.constant 0 : index
    %0 = vector.load %arg3[%c0, %c0_0] : memref<12x4xf32, #tpu.memory_space<vmem>>, vector<12x4xf32>
    %c0_1 = arith.constant 0 : index
    %c0_2 = arith.constant 0 : index
    %c0_3 = arith.constant 0 : index
    %1 = vector.load %arg2[%c0_1, %c0_2, %c0_3] : memref<1x4x128xf32, #tpu.memory_space<vmem>>, vector<1x4x128xf32>
    %2 = vector.shape_cast %1 : vector<1x4x128xf32> to vector<4x128xf32>
    %cst = arith.constant dense<0.000000e+00> : vector<12x128xf32>
    %3 = tpu.matmul %0, %2, %cst {dimension_numbers = #tpu.dot_dimension_numbers<[1], [0], [0], [1], [0, 0, 1, 1], [], []>} : vector<12x4xf32>, vector<4x128xf32>, vector<12x128xf32> -> vector<12x128xf32>
    %c0_4 = arith.constant 0 : index
    %c0_5 = arith.constant 0 : index
    %4 = vector.load %arg4[%c0_4, %c0_5] : memref<12x1xf32, #tpu.memory_space<vmem>>, vector<12x1xf32>
    %5 = vector.broadcast %4 : vector<12x1xf32> to vector<12x128xf32>
    %6 = arith.addf %3, %5 : vector<12x128xf32>
    %7 = vector.extract_strided_slice %6 {offsets = [0, 0], sizes = [4, 128], strides = [1, 1]} : vector<12x128xf32> to vector<4x128xf32>
    %cst_6 = arith.constant 5.000000e-01 : f32
    %8 = vector.broadcast %cst_6 : f32 to vector<4x128xf32>
    %9 = arith.mulf %7, %8 : vector<4x128xf32>
    %c0_7 = arith.constant 0 : index
    %c0_8 = arith.constant 0 : index
    %c0_9 = arith.constant 0 : index
    %10 = vector.load %arg5[%c0_7, %c0_8, %c0_9] : memref<1x4x128xf32, #tpu.memory_space<vmem>>, vector<1x4x128xf32>
    %11 = vector.shape_cast %10 : vector<1x4x128xf32> to vector<4x128xf32>
    %12 = vector.shape_cast %9 : vector<4x128xf32> to vector<1x4x128xf32>
    tpu.vector_store %arg5[%c0_7, %c0_8, %c0_9], %12 {strides = array<i32>} : memref<1x4x128xf32, #tpu.memory_space<vmem>>, vector<1x4x128xf32>,
    %13 = vector.extract_strided_slice %6 {offsets = [4, 0], sizes = [4, 128], strides = [1, 1]} : vector<12x128xf32> to vector<4x128xf32>
    %c0_10 = arith.constant 0 : index
    %c0_11 = arith.constant 0 : index
    %c0_12 = arith.constant 0 : index
    %14 = vector.load %arg6[%c0_10, %c0_11, %c0_12] : memref<1x4x128xf32, #tpu.memory_space<vmem>>, vector<1x4x128xf32>
    %15 = vector.shape_cast %14 : vector<1x4x128xf32> to vector<4x128xf32>
    %16 = vector.shape_cast %13 : vector<4x128xf32> to vector<1x4x128xf32>
    tpu.vector_store %arg6[%c0_10, %c0_11, %c0_12], %16 {strides = array<i32>} : memref<1x4x128xf32, #tpu.memory_space<vmem>>, vector<1x4x128xf32>,
    %17 = vector.extract_strided_slice %6 {offsets = [8, 0], sizes = [4, 128], strides = [1, 1]} : vector<12x128xf32> to vector<4x128xf32>
    %c0_13 = arith.constant 0 : index
    %c0_14 = arith.constant 0 : index
    %c0_15 = arith.constant 0 : index
    %18 = vector.load %arg7[%c0_13, %c0_14, %c0_15] : memref<1x4x128xf32, #tpu.memory_space<vmem>>, vector<1x4x128xf32>
    %19 = vector.shape_cast %18 : vector<1x4x128xf32> to vector<4x128xf32>
    %20 = vector.shape_cast %17 : vector<4x128xf32> to vector<1x4x128xf32>
    tpu.vector_store %arg7[%c0_13, %c0_14, %c0_15], %20 {strides = array<i32>} : memref<1x4x128xf32, #tpu.memory_space<vmem>>, vector<1x4x128xf32>,
    return
  }
  func.func @transform_0(%arg0: i32, %arg1: i32) -> (i32, i32, i32) {
    %c0_i32 = arith.constant 0 : i32
    %c0_i32_0 = arith.constant 0 : i32
    return %arg0, %c0_i32, %arg1 : i32, i32, i32
  }
  func.func @transform_1(%arg0: i32, %arg1: i32) -> (i32, i32) {
    %c0_i32 = arith.constant 0 : i32
    %c0_i32_0 = arith.constant 0 : i32
    %c0_i32_1 = arith.constant 0 : i32
    return %c0_i32, %c0_i32_0 : i32, i32
  }
  func.func @transform_2(%arg0: i32, %arg1: i32) -> (i32, i32) {
    %c0_i32 = arith.constant 0 : i32
    %c0_i32_0 = arith.constant 0 : i32
    %c0_i32_1 = arith.constant 0 : i32
    return %c0_i32, %c0_i32_0 : i32, i32
  }
  func.func @transform_3(%arg0: i32, %arg1: i32) -> (i32, i32, i32) {
    %c0_i32 = arith.constant 0 : i32
    %c0_i32_0 = arith.constant 0 : i32
    return %arg0, %c0_i32, %arg1 : i32, i32, i32
  }
  func.func @transform_4(%arg0: i32, %arg1: i32) -> (i32, i32, i32) {
    %c0_i32 = arith.constant 0 : i32
    %c0_i32_0 = arith.constant 0 : i32
    return %arg0, %c0_i32, %arg1 : i32, i32, i32
  }
  func.func @transform_5(%arg0: i32, %arg1: i32) -> (i32, i32, i32) {
    %c0_i32 = arith.constant 0 : i32
    %c0_i32_0 = arith.constant 0 : i32
    return %arg0, %c0_i32, %arg1 : i32, i32, i32
  }
}

</mosaic_0001>

<bundles_post_ra>
// kernel: tpu_custom_call.1
= control target key start
LH: loop header
LB: loop body
LE: loop exit
PB: predicated region body
PF: predicated region fallthrough
CT: control target
= control target key end

     0   :  { %s1033_s0 = inlined_call_operand.vmem [shape: f32[2,4,256], index: 0, kind: input, shape index: {}]   ;;  %s1034_s1 = inlined_call_operand.vmem [shape: f32[12,4], index: 1, kind: input, shape index: {}]   ;;  %s1035_s2 = inlined_call_operand.vmem [shape: f32[12,1], index: 2, kind: input, shape index: {}]   ;;  %s1036_s3 = inlined_call_operand.hbm [shape: f32[2,4,256], index: 3, kind: output, shape index: {0}]   ;;  %s1037_s4 = inlined_call_operand.hbm [shape: f32[2,4,256], index: 4, kind: output, shape index: {1}]   ;;  %s1038_s5 = inlined_call_operand.hbm [shape: f32[2,4,256], index: 5, kind: output, shape index: {2}]  }
   0x1   :  { %1043 = sst [smem:[#allocation10_spill]] %s1033_s0 }
   0x2   :  { %1044 = sst [smem:[#allocation11_spill]] %s1034_s1 }
   0x3   :  { %1045 = sst [smem:[#allocation12_spill]] %s1035_s2 }
   0x4   :  { %11 = vsyncpa [#allocation3], 0 }
   0x5   :  { %13 = vsyncpa [#allocation3 + $0x1], 0 }
   0x6   :  { %14 = vsyncpa [#allocation5], 0 }
   0x7   :  { %16 = vsyncpa [#allocation5 + $0x1], 0  ;;  %s823_s18 = smov 0   ;;  %s825_s19 = smov 0  }
   0x8   :  { %s827_s20 = smov 0   ;;  %s829_s21 = smov 0  }
   0x9   :  { %s831_s22 = smov 0   ;;  %s833_s23 = smov 0  }
   0xa   :  { %s835_s24 = smov 0   ;;  %s837_s25 = smov 0  }
   0xb LB: > { %s1040_s26 = sadd.s32 4294967295, %s790_s25   ;;  %s1039_s27 = sadd.s32 4294967294, %s790_s25   ;;  %s790_s25 = sphi %s837_s25, %s22_s25   ;;  %s786_s24 = sphi %s835_s24, %s1062_s24   ;;  %s782_s23 = sphi %s833_s23, %s1061_s23   ;;  %s778_s22 = sphi %s831_s22, %s1060_s22   ;;  %s774_s21 = sphi %s829_s21, %s1059_s21   ;;  %s770_s20 = sphi %s827_s20, %s1058_s20   ;;  %s766_s19 = sphi %s825_s19, %s1057_s19   ;;  %s762_s18 = sphi %s823_s18, %s1056_s18  }
   0xc   : > { %s31_s28 = sadd.s32 1, %s782_s23  ;;  %s34_s29 = sadd.s32 1, %s786_s24 }
   0xd   : > { %p32_p0 = scmp.ge.s32.totalorder %s31_s28, 2  ;;  %p123_p1 = scmp.ne.s32.totalorder %s770_s20, %s766_s19 }
   0xe   : > { %p124_p2 = scmp.eq.s32.totalorder %s1040_s26, 3  ;;  %p129_p5 = scmp.ne.s32.totalorder %s766_s19, %s762_s18 }
   0xf   : > { %s1064_s28 = smov (%p32_p0, %s31_s28), 0  ;;  %s1066_s29 = smov (!%p32_p0, %s34_s29), %s786_s24 }
  0x10   : > { %s109_s30 = ssub.s32 %s782_s23, %s1064_s28  ;;  %p876_p3 = por %p124_p2, %p123_p1 }
  0x11   : > { %p36_p4 = scmp.ge.s32.totalorder %s1066_s29, 2  ;;  %p130_p6 = scmp.eq.s32.totalorder %s1039_s27, 3 }
  0x12   : > { %p532_p7 = scmp.ge.s32.totalorder %s790_s25, 1  ;;  %p221_p9 = scmp.lt.s32.totalorder %s790_s25, 5 }
  0x13   : > { %s1068_s29 = smov (%p36_p4, %s1066_s29), 0  ;;  %p887_p8 = por %p130_p6, %p129_p5 }
  0x14   : > { %1047 = sst [smem:[#allocation9_spill]] %s1068_s29  ;;  %s108_s8 = ssub.s32 %s786_s24, %s1068_s29 }
  0x15   : > { %s113_s9 = sadd.s32 1, %s770_s20  ;;  %s110_s10 = sor.u32 %s109_s30, %s108_s8 }
  0x16   : > { %p222_p10 = pnand %p532_p7, %p221_p9  ;;  %p111_p11 = scmp.eq.s32.totalorder %s110_s10, 0 }
  0x17   : > { %s1049_s2 = sld [smem:[#allocation12_spill]] (!%p222_p10)  ;;  %p262_p12 = scmp.lt.s32.totalorder (!%p222_p10), %s778_s22, 1 }
  0x18   : > { %s896_s11 = scalar_select %p111_p11, %s770_s20, %s113_s9  }
  0x19   : > { %225 = sbr.rel (%p222_p10) target bundleno = 194 (0xc2), region = 32  ;;  %p264_p13 = scmp.lt.s32.totalorder (!%p222_p10), %s774_s21, 1 }
  0x1a   : > { %s1050_s0 = sld [smem:[#allocation10_spill]] (!%p222_p10) }
  0x1b   : > { %s1051_s1 = sld [smem:[#allocation11_spill]] (!%p222_p10) }
  0x1e   : > { %v273_v0 = vld [vmem:[%s1049_s2] sm:$0xff]  ;;  %v792_v1 = vmov 0   ;;  %s263_s14 = scalar_select %p262_p12, %s778_s22, 1  ;;  %vm292_vm0 = vcmask 1043456   ;;  %vm285_vm1 = vcmask 31744  }
  0x1f   : > { %635 = vset.pattern.permute.xlu0 %v792_v1  ;;  %s265_s15 = scalar_select %p264_p13, %s774_s21, 1  ;;  %v274_v5 = vld [vmem:[%s1049_s2 + $0x8] sm:$0xf] }
  0x20   : > { %277 = vperm.xlu0 %635, %v273_v0   ;;  %s536_s16 = sshll.u32 %s263_s14, 1 }
  0x21   : > { %s267_s17 = sadd.s32 %s536_s16, %s265_s15  ;;  %v270_v2 = vld [vmem:[%s1051_s1] sm:$0xff]  ;;  %v271_v3 = vld [vmem:[%s1051_s1 + $0x8] sm:$0xf]  ;;  %s1041_s16 = sand.u32 1, %s766_s19  }
  0x22   : > { %s537_s30 = sshll.u32 %s267_s17, 2  ;;  %s544_s17 = sshll.u32 %s778_s22, 1 }
  0x23   : > { %s269_s10 = scalar_lea.vmem %s1050_s0, %s537_s30  ;;  %s921_s30 = sshll.u32 %s1041_s16, 2 }
  0x24   : > { %v272_v4 = vld [vmem:[%s269_s10] sm:$0xf]  ;;  %s344_s26 = sadd.s32 %s774_s21, %s544_s17  ;;  %s261_s8 = scalar_lea.vmem [#allocation6], %s921_s30 }
  0x25   : > { %538 = vmatpush.msk.msra.mxu0 %vm292_vm0, %v272_v4  ;;  %552 = vmatpush.msk.msra.mxu1 %vm292_vm0, %v272_v4  ;;  %s545_s27 = sshll.u32 %s344_s26, 2  ;;  %s925_s9 = sshll.u32 %s261_s8, 4  ;;  %s381_s9 = int_to_ptr.vmem [resolvable:$true] %s925_s9 }
  0x26   : > { %539 = vmatmul.msk.f32.vlgmr.msra.gmra.mxu0 %vm285_vm1, %v270_v2  ;;  %540 = vmatmul.msk.f32.vlgmr.msra.gmra.mxu1 %vm285_vm1, %v271_v3  ;;  %s1052_s10 = sadd.s32 4294967295, %s790_s25   ;;  %s362_s22 = scalar_lea.hbm %s1037_s4, %s545_s27 }
  0x27   : > { %s929_s12 = sand.u32 1, %s1052_s10   ;;  %s378_s0 = scalar_lea.hbm %s1038_s5, %s545_s27 }
  0x28   : > { %282 = vperm.xlu0 %635, %v274_v5   ;;  %s346_s17 = scalar_lea.hbm %s1036_s3, %s545_s27  ;;  %s254_s26 = scalar_lea.vmem [#allocation4], %s921_s30 }
  0x29   : > { %s942_s2 = sshll.u32 %s254_s26, 4  ;;  %s944_s29 = sshll.u32 %s362_s22, 4  ;;  %s365_s2 = int_to_ptr.vmem [resolvable:$true] %s942_s2  ;;  %s367_s29 = int_to_ptr.hbm [resolvable:$true] %s944_s29 }
  0x2a   : > { %s946_s10 = sshll.u32 %s378_s0, 4  ;;  %s247_s16 = scalar_lea.vmem [#allocation2], %s921_s30  ;;  %s383_s10 = int_to_ptr.hbm [resolvable:$true] %s946_s10 }
  0x2b   : > { %s949_s13 = sshll.u32 %s247_s16, 4  ;;  %s951_s1 = sshll.u32 %s346_s17, 4  ;;  %s349_s13 = int_to_ptr.vmem [resolvable:$true] %s949_s13  ;;  %s351_s1 = int_to_ptr.hbm [resolvable:$true] %s951_s1 }
  0x2c   : > { %s329_s0 = scalar_lea.sflag [#allocation5], %s929_s12  ;;  %s650_s27 = sshra.s32 %s367_s29, 4  ;;  %s651_s27 = int_to_ptr.hbm [resolvable:$true] %s650_s27 }
  0x2d   : > { %s652_s30 = scalar_lea.hbm %s651_s27, 4  ;;  %s656_s15 = scalar_lea.hbm %s1037_s4, 16 }
  0x2e   : > { %p653_p0 = scmp.ne.s32.totalorder %s651_s27, %s652_s30  ;;  %p657_p4 = scmp.lt.s32.totalorder %s651_s27, %s1037_s4 }
  0x2f   : > { %p658_p5 = scmp.lt.s32.totalorder %s656_s15, %s652_s30 }
  0x30   : > { %p654_p1 = pnand %p653_p0, %p876_p3 }
  0x31   : > { %p659_p6 = por %p658_p5, %p657_p4 }
  0x32   : > { %p655_p2 = pneg %p654_p1 }
  0x34   : > { %p660_p7 = pnand %p659_p6, %p655_p2 }
  0x92   : > { %v278_v6 = vpop.permute.xlu0 %277 }
  0x9a   : > { %v283_v7 = vpop.permute.xlu0 %282 }
  0xa3   : > { %v313_v8 = vpop.f32.mrf.mxu0  ;;  %v316_v9 = vpop.f32.mrf.mxu1 }
  0xa4   : > { %v314_v10 = vadd.f32 %v313_v8, %v278_v6  ;;  %v317_v11 = vadd.f32 %v316_v9, %v283_v7 }
  0xa6   : > { %v319_v12 = vmul.f32 0.5, %v314_v10  ;;  %321 = vst [vmem:[%s254_s26 - $0x4] sm:$0xf0] %v314_v10 }
  0xa7   : > { %322 = vst [vmem:[%s261_s8] sm:$0xf] %v317_v11 }
  0xa8   : > { %663 = shalt.err (!%p660_p7)
}
  0xa9   : > { %554 = dma.vmem_to_hbm [thread:$0]  (%p876_p3), %s365_s2, 64, %s367_s29, %s329_s0   ;;  %320 = vst [vmem:[%s247_s16] sm:$0xf] %v319_v12 }
  0xaa   : > { %s678_s8 = sshra.s32 %s383_s10, 4  ;;  %s684_s30 = scalar_lea.hbm %s1038_s5, 16  ;;  %s679_s8 = int_to_ptr.hbm [resolvable:$true] %s678_s8 }
  0xab   : > { %s680_s12 = scalar_lea.hbm %s679_s8, 4  ;;  %p685_p12 = scmp.lt.s32.totalorder %s679_s8, %s1038_s5 }
  0xac   : > { %p681_p9 = scmp.ne.s32.totalorder %s679_s8, %s680_s12  ;;  %p686_p13 = scmp.lt.s32.totalorder %s684_s30, %s680_s12 }
  0xae   : > { %p682_p10 = pnand %p681_p9, %p876_p3  ;;  %p687_p0 = por %p686_p13, %p685_p12 }
  0xb0   : > { %p683_p11 = pneg %p682_p10 }
  0xb2   : > { %p688_p1 = pnand %p687_p0, %p683_p11 }
  0xb4   : > { %691 = shalt.err (!%p688_p1)
}
  0xb5   : > { %555 = dma.vmem_to_hbm [thread:$0]  (%p876_p3), %s381_s9, 64, %s383_s10, %s329_s0  }
  0xb6   : > { %s1053_s2 = sand.u32 1, %s766_s19   ;;  %s706_s16 = sshra.s32 %s351_s1, 4  ;;  %s707_s16 = int_to_ptr.hbm [resolvable:$true] %s706_s16 }
  0xb7   : > { %s324_s29 = scalar_lea.sflag [#allocation3], %s1053_s2  ;;  %s708_s15 = scalar_lea.hbm %s707_s16, 4 }
  0xb8   : > { %p709_p2 = scmp.ne.s32.totalorder %s707_s16, %s708_s15  ;;  %s712_s8 = scalar_lea.hbm %s1036_s3, 16 }
  0xb9   : > { %p713_p6 = scmp.lt.s32.totalorder %s707_s16, %s1036_s3  ;;  %p714_p7 = scmp.lt.s32.totalorder %s712_s8, %s708_s15 }
  0xba   : > { %p710_p4 = pnand %p709_p2, %p876_p3 }
  0xbb   : > { %p715_p9 = por %p714_p7, %p713_p6 }
  0xbc   : > { %p711_p5 = pneg %p710_p4 }
  0xbe   : > { %p716_p10 = pnand %p715_p9, %p711_p5 }
  0xc0   : > { %719 = shalt.err (!%p716_p10)
}
  0xc1   : > { %553 = dma.vmem_to_hbm [thread:$0]  (%p876_p3), %s349_s13, 64, %s351_s1, %s324_s29  }
  0xc2 PF: > { %p569_p11 = scmp.ge.s32.totalorder %s790_s25, 2  ;;  %s394_s9 = sand.u32 1, %s762_s18  }
  0xc3   : > { %s395_s10 = scalar_lea.sflag [#allocation3], %s394_s9 }
  0xc4   : > { %p560_p12 = pnand %p569_p11, %p887_p8 }
  0xc6   : > { %p561_p13 = pneg %p560_p12 }
  0xc8   : > { %753 = dma.done.wait (%p561_p13), %s395_s10, 64  }
  0xc9   : > { %755 = vsyncadd (%p561_p13), %s395_s10, 4294967232  ;;  %s1054_s0 = sadd.s32 4294967294, %s790_s25  }
  0xca   : > { %s404_s6 = sand.u32 1, %s1054_s0  }
  0xcb   : > { %s405_s27 = scalar_lea.sflag [#allocation5], %s404_s6 }
  0xcc   : > { %757 = dma.done.wait (%p561_p13), %s405_s27, 128  }
  0xcd   : > { %759 = vsyncadd (%p561_p13), %s405_s27, 4294967168  ;;  %s22_s25 = sadd.s32 1, %s790_s25   ;;  %s1055_s7 = sld [smem:[#allocation9_spill]] }
  0xce   : > { %p19_p3 = scmp.ge.s32.totalorder %s22_s25, 6   ;;  %s1056_s18 = smov %s766_s19 }
  0xcf   : > { %s1057_s19 = smov %s770_s20  ;;  %s1058_s20 = smov %s896_s11 }
  0xd0   : > { %s1059_s21 = smov %s782_s23  ;;  %s1060_s22 = smov %s786_s24 }
  0xd1   : > { %s1061_s23 = smov %s1064_s28  ;;  %21 = sbr.rel (!%p19_p3) target bundleno = 11 (0xb), region = 99 }
  0xd3   : > { %s1062_s24 = smov %s1055_s7 }
  0xd6   :  { %421 = vsyncpa [#allocation3], 1 }
  0xd7   :  { %423 = vsyncpa [#allocation3 + $0x1], 1 }
  0xd8   :  { %424 = vsyncpa [#allocation5], 1 }
  0xd9   :  { %426 = vsyncpa [#allocation5 + $0x1], 1 }

</bundles_post_ra>
